<compile_context>
chip_gen: v6e
topology: v6e:2x2x1
jax: 0.10.0
libtpu: 0.0.40
codegen_flags: <defaults>
</compile_context>

<pallas_src>
import functools

import jax
import jax.numpy as jnp
import numpy as np
from jax.experimental import pallas as pl
from jax.experimental.pallas import tpu as pltpu


def _backbone_kernel(patches_ref, w_ref, b_ref, feat_ref):
    """One (M-tile, K-tile) step: accumulate matmul into the resident output."""
    k = pl.program_id(1)

    @pl.when(k == 0)
    def _():
        feat_ref[...] = jnp.zeros_like(feat_ref)

    feat_ref[...] += jnp.dot(patches_ref[...], w_ref[...],
                             preferred_element_type=jnp.float32)

    @pl.when(k == pl.num_programs(1) - 1)
    def _():
        feat_ref[...] = jnp.maximum(feat_ref[...] + b_ref[...], 0.0)


def _round_up(x, m):
    return ((x + m - 1) // m) * m


def _patchify(x, s):
    """(N, C, H, W) -> (N*Ho*Wo, C*s*s), conv-weight-compatible ordering."""
    N, C, H, W = x.shape
    Ho, Wo = H // s, W // s
    x = x.reshape(N, C, Ho, s, Wo, s)
    x = x.transpose(0, 2, 4, 1, 3, 5)          # N, Ho, Wo, C, s, s
    return x.reshape(N * Ho * Wo, C * s * s)


@functools.partial(jax.jit, static_argnames=("stride",))
def backbone_base_forward(x, mask, w, b, *, stride):
    """BackboneBase.forward for the return_interm_layers=False path.

    Args:
      x:    (N, C, H, W) float32   -- tensor_list.tensors (NCHW)
      mask: (N, H, W)    bool      -- tensor_list.mask (True == padding)
      w:    (C*stride*stride, Cout) float32 conv-as-matmul weight
      b:    (Cout,) float32 bias
    Returns:
      {'0': (features NCHW (N, Cout, Ho, Wo) float32,
             mask (N, Ho, Wo) bool)}
    """
    N, C, H, W = x.shape
    Ho, Wo = H // stride, W // stride
    M = N * Ho * Wo
    K = C * stride * stride
    Cout = w.shape[1]

    # Mask path: F.interpolate(..., mode='nearest') with an integer stride
    # ratio picks input index i*stride -> exactly a strided slice. Free.
    mask_o = mask[:, ::stride, ::stride]

    # ---- tile / pad sizes (lane & sublane aligned, VMEM-bounded) ----------
    tm = min(256, _round_up(M, 8))           # M tile (parallel axis)
    M_pad = _round_up(M, tm)
    tk = min(512, _round_up(K, 128))         # K tile (reduction axis)
    K_pad = _round_up(K, tk)
    Cout_pad = _round_up(Cout, 128)          # lane-dense output (240 -> 256)

    # ---- operands: bf16 matmul inputs, f32 bias / accumulator -------------
    patches = _patchify(x, stride).astype(jnp.bfloat16)           # (M, K)
    if (M_pad != M) or (K_pad != K):
        patches = jnp.pad(patches, ((0, M_pad - M), (0, K_pad - K)))
    wp = w.astype(jnp.bfloat16)
    if (K_pad != K) or (Cout_pad != Cout):
        wp = jnp.pad(wp, ((0, K_pad - K), (0, Cout_pad - Cout)))
    b2d = jnp.pad(b.astype(jnp.float32), (0, Cout_pad - Cout)).reshape(1, Cout_pad)

    grid = (M_pad // tm, K_pad // tk)

    feat = pl.pallas_call(
        _backbone_kernel,
        out_shape=jax.ShapeDtypeStruct((M_pad, Cout_pad), jnp.float32),
        grid_spec=pltpu.PrefetchScalarGridSpec(
            num_scalar_prefetch=0,
            grid=grid,
            in_specs=[
                pl.BlockSpec((tm, tk), lambda i, k: (i, k)),        # patches
                pl.BlockSpec((tk, Cout_pad), lambda i, k: (k, 0)),  # weight
                pl.BlockSpec((1, Cout_pad), lambda i, k: (0, 0)),   # bias
            ],
            out_specs=pl.BlockSpec((tm, Cout_pad), lambda i, k: (i, 0)),
        ),
        compiler_params=pltpu.CompilerParams(
            dimension_semantics=("parallel", "arbitrary"),
            vmem_limit_bytes=48 * 1024 * 1024,
        ),
    )(patches, wp, b2d)

    feat = feat[:M, :Cout].reshape(N, Ho, Wo, Cout).transpose(0, 3, 1, 2)
    return {"0": (feat, mask_o)}


if __name__ == "__main__":
    key = jax.random.PRNGKey(0)
    kx, kw, kb = jax.random.split(key, 3)

    # Small shapes consistent with the module: stride=32, num_channels=240.
    N, C, H, W = 2, 4, 64, 64
    stride, Cout = 32, 240
    K = C * stride * stride

    x = jax.random.normal(kx, (N, C, H, W), dtype=jnp.float32)
    w = jax.random.normal(kw, (K, Cout), dtype=jnp.float32) / np.sqrt(K)
    b = 0.01 * jax.random.normal(kb, (Cout,), dtype=jnp.float32)

    # NestedTensor padding mask (True = padded); pad the right half.
    mask = jnp.zeros((N, H, W), dtype=bool).at[:, :, W // 2:].set(True)

    out = backbone_base_forward(x, mask, w, b, stride=stride)
    out = jax.tree_util.tree_map(jax.block_until_ready, out)

    feat, mask_o = out["0"]

    # Pure-JAX reference (bf16 operands, f32 accumulate — same numerics).
    patches = _patchify(x, stride)
    ref_feat = jnp.maximum(
        jnp.dot(patches.astype(jnp.bfloat16), w.astype(jnp.bfloat16),
                preferred_element_type=jnp.float32) + b, 0.0)
    ref_feat = ref_feat.reshape(N, H // stride, W // stride, Cout)
    ref_feat = ref_feat.transpose(0, 3, 1, 2)
    ref_mask = mask[:, ::stride, ::stride]

    assert feat.shape == (N, Cout, H // stride, W // stride)
    assert mask_o.shape == (N, H // stride, W // stride)
    assert mask_o.dtype == jnp.bool_
    np.testing.assert_allclose(np.asarray(feat), np.asarray(ref_feat),
                               rtol=1e-2, atol=1e-2)
    np.testing.assert_array_equal(np.asarray(mask_o), np.asarray(ref_mask))

    print("KERNEL_OK")
</pallas_src>

<mosaic_0001>
module attributes {stable_mosaic.version = 11 : i64} {
  func.func @_backbone_kernel(%arg0: i32, %arg1: i32, %arg2: memref<8x512xbf16, #tpu.memory_space<vmem>>, %arg3: memref<512x256xbf16, #tpu.memory_space<vmem>>, %arg4: memref<1x256xf32, #tpu.memory_space<vmem>>, %arg5: memref<8x256xf32, #tpu.memory_space<vmem>>) attributes {dimension_semantics = [#tpu.dimension_semantics<parallel>, #tpu.dimension_semantics<arbitrary>], iteration_bounds = array<i64: 1, 8>, scalar_prefetch = 0 : i64, scratch_operands = 0 : i64, tpu.core_type = #tpu.core_type<tc>, window_params = [{transform_indices = @transform_0, window_bounds = array<i64: 8, 512>}, {transform_indices = @transform_1, window_bounds = array<i64: 512, 256>}, {pipeline_mode = #tpu.pipeline_mode<synchronous>, transform_indices = @transform_2, window_bounds = array<i64: 1, 256>}, {transform_indices = @transform_3, window_bounds = array<i64: 8, 256>}]} {
    %c0_i32 = arith.constant 0 : i32
    %0 = arith.cmpi eq, %arg1, %c0_i32 : i32
    %1 = arith.extui %0 : i1 to i32
    %c0_i32_0 = arith.constant 0 : i32
    %2 = arith.cmpi ne, %1, %c0_i32_0 : i32
    scf.if %2 {
      %cst_9 = arith.constant 0.000000e+00 : f32
      %12 = vector.broadcast %cst_9 : f32 to vector<8x256xf32>
      %c0_10 = arith.constant 0 : index
      %c0_11 = arith.constant 0 : index
      %13 = vector.load %arg5[%c0_10, %c0_11] : memref<8x256xf32, #tpu.memory_space<vmem>>, vector<8x256xf32>
      tpu.vector_store %arg5[%c0_10, %c0_11], %12 {strides = array<i32>} : memref<8x256xf32, #tpu.memory_space<vmem>>, vector<8x256xf32>,
    } else {
    }
    %c0 = arith.constant 0 : index
    %c0_1 = arith.constant 0 : index
    %3 = vector.load %arg5[%c0, %c0_1] : memref<8x256xf32, #tpu.memory_space<vmem>>, vector<8x256xf32>
    %c0_2 = arith.constant 0 : index
    %c0_3 = arith.constant 0 : index
    %4 = vector.load %arg2[%c0_2, %c0_3] : memref<8x512xbf16, #tpu.memory_space<vmem>>, vector<8x512xbf16>
    %c0_4 = arith.constant 0 : index
    %c0_5 = arith.constant 0 : index
    %5 = vector.load %arg3[%c0_4, %c0_5] : memref<512x256xbf16, #tpu.memory_space<vmem>>, vector<512x256xbf16>
    %cst = arith.constant dense<0.000000e+00> : vector<8x256xf32>
    %6 = tpu.matmul %4, %5, %cst {dimension_numbers = #tpu.dot_dimension_numbers<[1], [0], [0], [1], [0, 0, 1, 1], [], []>} : vector<8x512xbf16>, vector<512x256xbf16>, vector<8x256xf32> -> vector<8x256xf32>
    %7 = arith.addf %3, %6 : vector<8x256xf32>
    %c0_6 = arith.constant 0 : index
    %c0_7 = arith.constant 0 : index
    %8 = vector.load %arg5[%c0_6, %c0_7] : memref<8x256xf32, #tpu.memory_space<vmem>>, vector<8x256xf32>
    tpu.vector_store %arg5[%c0_6, %c0_7], %7 {strides = array<i32>} : memref<8x256xf32, #tpu.memory_space<vmem>>, vector<8x256xf32>,
    %c7_i32 = arith.constant 7 : i32
    %9 = arith.cmpi eq, %arg1, %c7_i32 : i32
    %10 = arith.extui %9 : i1 to i32
    %c0_i32_8 = arith.constant 0 : i32
    %11 = arith.cmpi ne, %10, %c0_i32_8 : i32
    scf.if %11 {
      %c0_9 = arith.constant 0 : index
      %c0_10 = arith.constant 0 : index
      %12 = vector.load %arg5[%c0_9, %c0_10] : memref<8x256xf32, #tpu.memory_space<vmem>>, vector<8x256xf32>
      %c0_11 = arith.constant 0 : index
      %c0_12 = arith.constant 0 : index
      %13 = vector.load %arg4[%c0_11, %c0_12] : memref<1x256xf32, #tpu.memory_space<vmem>>, vector<1x256xf32>
      %14 = vector.broadcast %13 : vector<1x256xf32> to vector<8x256xf32>
      %15 = arith.addf %12, %14 : vector<8x256xf32>
      %cst_13 = arith.constant 0.000000e+00 : f32
      %16 = vector.broadcast %cst_13 : f32 to vector<8x256xf32>
      %17 = arith.maximumf %15, %16 : vector<8x256xf32>
      %c0_14 = arith.constant 0 : index
      %c0_15 = arith.constant 0 : index
      %18 = vector.load %arg5[%c0_14, %c0_15] : memref<8x256xf32, #tpu.memory_space<vmem>>, vector<8x256xf32>
      tpu.vector_store %arg5[%c0_14, %c0_15], %17 {strides = array<i32>} : memref<8x256xf32, #tpu.memory_space<vmem>>, vector<8x256xf32>,
    } else {
    }
    return
  }
  func.func @transform_0(%arg0: i32, %arg1: i32) -> (i32, i32) {
    %c0_i32 = arith.constant 0 : i32
    return %arg0, %arg1 : i32, i32
  }
  func.func @transform_1(%arg0: i32, %arg1: i32) -> (i32, i32) {
    %c0_i32 = arith.constant 0 : i32
    %c0_i32_0 = arith.constant 0 : i32
    return %arg1, %c0_i32 : i32, i32
  }
  func.func @transform_2(%arg0: i32, %arg1: i32) -> (i32, i32) {
    %c0_i32 = arith.constant 0 : i32
    %c0_i32_0 = arith.constant 0 : i32
    %c0_i32_1 = arith.constant 0 : i32
    return %c0_i32, %c0_i32_0 : i32, i32
  }
  func.func @transform_3(%arg0: i32, %arg1: i32) -> (i32, i32) {
    %c0_i32 = arith.constant 0 : i32
    %c0_i32_0 = arith.constant 0 : i32
    return %arg0, %c0_i32 : i32, i32
  }
}

</mosaic_0001>

<bundles_post_ra>
// kernel: backbone_base_forward.1
= control target key start
LH: loop header
LB: loop body
LE: loop exit
PB: predicated region body
PF: predicated region fallthrough
CT: control target
= control target key end

     0   :  { %s1074_s12 = smov 0   ;;  %s1076_s13 = smov 0   ;;  %s1216_s0 = inlined_call_operand.vmem [shape: bf16[8,4096], index: 0, kind: input, shape index: {}]   ;;  %s1217_s1 = inlined_call_operand.vmem [shape: bf16[4096,256], index: 1, kind: input, shape index: {}]   ;;  %s1218_s2 = inlined_call_operand.vmem [shape: f32[1,256], index: 2, kind: input, shape index: {}]   ;;  %s1219_s3 = inlined_call_operand.vmem [shape: f32[8,256], index: 3, kind: output, shape index: {}]  }
   0x1   :  { %s1078_s14 = smov 0  }
   0x2 LB: > { %s22_s15 = sadd.s32 1, %s1047_s13  ;;  %p824_p0 = scmp.ge.s32.totalorder %s1051_s14, 1  ;;  %s1051_s14 = sphi %s1078_s14, %s13_s14   ;;  %s1047_s13 = sphi %s1076_s13, %s1221_s13   ;;  %s1043_s12 = sphi %s1074_s12, %s1220_s12  }
   0x3   : > { %p23_p1 = scmp.ge.s32.totalorder %s22_s15, 8  ;;  %p168_p2 = scmp.lt.s32.totalorder %s1051_s14, 9 }
   0x5   : > { %s1223_s15 = smov (%p23_p1, %s22_s15), 0  ;;  %p169_p3 = pnand %p824_p0, %p168_p2 }
   0x6   : > { %s825_s16 = sshll.u32 (!%p169_p3), %s1043_s12, 2  ;;  %s827_s17 = sshll.u32 (!%p169_p3), %s1043_s12, 6 }
   0x7   : > { %172 = sbr.rel (%p169_p3) target bundleno = 301 (0x12d), region = 32  ;;  %p205_p4 = scmp.lt.s32.totalorder (!%p169_p3), %s825_s16, 31 }
   0x8   : > { %p213_p5 = scmp.lt.s32.totalorder (!%p169_p3), %s827_s17, 511  ;;  %p830_p6 = scmp.ne.s32.totalorder (!%p169_p3), %s1043_s12, 0 }
   0xc   : > { %s1225_s16 = smov (!%p205_p4, %s825_s16), 31  ;;  %s1227_s17 = smov (!%p213_p5, %s827_s17), 511 }
   0xd   : > { %s826_s18 = sshll.u32 %s1225_s16, 2  ;;  %s903_s22 = sshll.u32 %s1227_s17, 3 }
   0xe   : > { %s1099_s21 = scalar_lea.vmem %s1216_s0, %s826_s18  ;;  %s1104_s25 = scalar_lea.vmem %s1217_s1, %s903_s22 }
   0xf   : > { %227 = sbr.rel (%p830_p6) target bundleno = 22 (0x16), region = 36 }
  0x14   : > { %v1053_v0 = vmov 0.0  }
  0x15   : > { %228 = vst [vmem:[%s1219_s3] sm:$0xff] %v1053_v0  ;;  %229 = vst [vmem:[%s1219_s3 + $0x8] sm:$0xff] %v1053_v0 }
  0x16 PF: > { %v929_v1 = vld [vmem:[%s1104_s25 + $0x74] ss:$8 sps:$4 sm:$0xff]   ;;  %v933_v3 = vld [vmem:[%s1104_s25 + $0x70] ss:$8 sps:$4 sm:$0xff]   ;;  %v935_v5 = vld [vmem:[%s1104_s25 + $0x64] ss:$8 sps:$4 sm:$0xff]  }
  0x17   : > { %v931_v2 = vld [vmem:[%s1104_s25 + $0x174] ss:$8 sps:$4 sm:$0xff]   ;;  %632 = vmatprep.subr.bf16.mxu0 %v929_v1  ;;  %v934_v4 = vld [vmem:[%s1104_s25 + $0x170] ss:$8 sps:$4 sm:$0xff]   ;;  %v937_v6 = vld [vmem:[%s1104_s25 + $0x164] ss:$8 sps:$4 sm:$0xff]  }
  0x18   : > { %673 = vmatprep.subr.bf16.mxu1 %v931_v2  ;;  %633 = vmatpush1.bf16.msra.mxu0 %v933_v3  ;;  %v939_v7 = vld [vmem:[%s1104_s25 + $0x60] ss:$8 sps:$4 sm:$0xff]   ;;  %v941_v9 = vld [vmem:[%s1104_s25 + $0x54] ss:$8 sps:$4 sm:$0xff]   ;;  %v945_v11 = vld [vmem:[%s1104_s25 + $0x50] ss:$8 sps:$4 sm:$0xff]  }
  0x19   : > { %674 = vmatpush1.bf16.msra.mxu1 %v934_v4  ;;  %634 = vmatprep.subr.bf16.mxu0 %v935_v5  ;;  %v940_v8 = vld [vmem:[%s1104_s25 + $0x160] ss:$8 sps:$4 sm:$0xff]   ;;  %v943_v10 = vld [vmem:[%s1104_s25 + $0x154] ss:$8 sps:$4 sm:$0xff]   ;;  %v946_v12 = vld [vmem:[%s1104_s25 + $0x150] ss:$8 sps:$4 sm:$0xff]  }
  0x1a   : > { %675 = vmatprep.subr.bf16.mxu1 %v937_v6  ;;  %v947_v13 = vld [vmem:[%s1104_s25 + $0x44] ss:$8 sps:$4 sm:$0xff]   ;;  %v951_v15 = vld [vmem:[%s1104_s25 + $0x40] ss:$8 sps:$4 sm:$0xff]   ;;  %v953_v17 = vld [vmem:[%s1104_s25 + $0x34] ss:$8 sps:$4 sm:$0xff]  }
  0x1b   : > { %v949_v14 = vld [vmem:[%s1104_s25 + $0x144] ss:$8 sps:$4 sm:$0xff]   ;;  %v952_v16 = vld [vmem:[%s1104_s25 + $0x140] ss:$8 sps:$4 sm:$0xff]   ;;  %v955_v18 = vld [vmem:[%s1104_s25 + $0x134] ss:$8 sps:$4 sm:$0xff]  }
  0x1c   : > { %635 = vmatpush1.bf16.msra.mxu0 %v939_v7  ;;  %v957_v19 = vld [vmem:[%s1104_s25 + $0x30] ss:$8 sps:$4 sm:$0xff]   ;;  %v959_v21 = vld [vmem:[%s1104_s25 + $0x24] ss:$8 sps:$4 sm:$0xff]   ;;  %v963_v23 = vld [vmem:[%s1104_s25 + $0x20] ss:$8 sps:$4 sm:$0xff]  }
  0x1d   : > { %676 = vmatpush1.bf16.msra.mxu1 %v940_v8  ;;  %636 = vmatprep.subr.bf16.mxu0 %v941_v9  ;;  %v958_v20 = vld [vmem:[%s1104_s25 + $0x130] ss:$8 sps:$4 sm:$0xff]   ;;  %v961_v22 = vld [vmem:[%s1104_s25 + $0x124] ss:$8 sps:$4 sm:$0xff]   ;;  %v964_v24 = vld [vmem:[%s1104_s25 + $0x120] ss:$8 sps:$4 sm:$0xff]  }
  0x1e   : > { %677 = vmatprep.subr.bf16.mxu1 %v943_v10  ;;  %v965_v25 = vld [vmem:[%s1104_s25 + $0x14] ss:$8 sps:$4 sm:$0xff]   ;;  %v969_v27 = vld [vmem:[%s1104_s25 + $0x10] ss:$8 sps:$4 sm:$0xff]   ;;  %v971_v29 = vld [vmem:[%s1104_s25 + $0x4] ss:$8 sps:$4 sm:$0xff]  }
  0x1f   : > { %v967_v26 = vld [vmem:[%s1104_s25 + $0x114] ss:$8 sps:$4 sm:$0xff]   ;;  %v970_v28 = vld [vmem:[%s1104_s25 + $0x110] ss:$8 sps:$4 sm:$0xff]   ;;  %v973_v30 = vld [vmem:[%s1104_s25 + $0x104] ss:$8 sps:$4 sm:$0xff]  }
  0x20   : > { %637 = vmatpush1.bf16.msra.mxu0 %v945_v11  ;;  %v975_v31 = vld [vmem:[%s1104_s25] ss:$8 sps:$4 sm:$0xff]   ;;  %v977_v33 = vld [vmem:[%s1104_s25 + $0xf4] ss:$8 sps:$4 sm:$0xff]   ;;  %v981_v35 = vld [vmem:[%s1104_s25 + $0xf0] ss:$8 sps:$4 sm:$0xff]  }
  0x21   : > { %678 = vmatpush1.bf16.msra.mxu1 %v946_v12  ;;  %638 = vmatprep.subr.bf16.mxu0 %v947_v13  ;;  %v976_v32 = vld [vmem:[%s1104_s25 + $0x100] ss:$8 sps:$4 sm:$0xff]   ;;  %v979_v34 = vld [vmem:[%s1104_s25 + $0x1f4] ss:$8 sps:$4 sm:$0xff]   ;;  %v982_v36 = vld [vmem:[%s1104_s25 + $0x1f0] ss:$8 sps:$4 sm:$0xff]  }
  0x22   : > { %679 = vmatprep.subr.bf16.mxu1 %v949_v14  ;;  %v983_v37 = vld [vmem:[%s1104_s25 + $0xe4] ss:$8 sps:$4 sm:$0xff]   ;;  %v987_v39 = vld [vmem:[%s1104_s25 + $0xe0] ss:$8 sps:$4 sm:$0xff]   ;;  %v989_v41 = vld [vmem:[%s1104_s25 + $0xd4] ss:$8 sps:$4 sm:$0xff]  }
  0x23   : > { %v985_v38 = vld [vmem:[%s1104_s25 + $0x1e4] ss:$8 sps:$4 sm:$0xff]   ;;  %v988_v40 = vld [vmem:[%s1104_s25 + $0x1e0] ss:$8 sps:$4 sm:$0xff]   ;;  %v991_v42 = vld [vmem:[%s1104_s25 + $0x1d4] ss:$8 sps:$4 sm:$0xff]  }
  0x24   : > { %639 = vmatpush1.bf16.msra.mxu0 %v951_v15  ;;  %v993_v43 = vld [vmem:[%s1104_s25 + $0xd0] ss:$8 sps:$4 sm:$0xff]   ;;  %v995_v45 = vld [vmem:[%s1104_s25 + $0xc4] ss:$8 sps:$4 sm:$0xff]   ;;  %v999_v50 = vld [vmem:[%s1104_s25 + $0xc0] ss:$8 sps:$4 sm:$0xff]  }
  0x25   : > { %680 = vmatpush1.bf16.msra.mxu1 %v952_v16  ;;  %640 = vmatprep.subr.bf16.mxu0 %v953_v17  ;;  %v994_v44 = vld [vmem:[%s1104_s25 + $0x1d0] ss:$8 sps:$4 sm:$0xff]   ;;  %v997_v46 = vld [vmem:[%s1104_s25 + $0x1c4] ss:$8 sps:$4 sm:$0xff]   ;;  %v1000_v51 = vld [vmem:[%s1104_s25 + $0x1c0] ss:$8 sps:$4 sm:$0xff]  }
  0x26   : > { %681 = vmatprep.subr.bf16.mxu1 %v955_v18  ;;  %v232_v47 = vld [vmem:[%s1099_s21] sm:$0xff]  ;;  %v233_v49 = vld [vmem:[%s1099_s21 + $0x8] sm:$0xff]  ;;  %v1001_v53 = vld [vmem:[%s1104_s25 + $0xb4] ss:$8 sps:$4 sm:$0xff]   ;;  %p899_p7 = scmp.ne.s32.totalorder %s1043_s12, 7 }
  0x27   : > { %v832_v48 = vcombine.high %v232_v47, %v232_v47  ;;  %v834_v52 = vcombine.high %v233_v49, %v233_v49  ;;  %v1003_v54 = vld [vmem:[%s1104_s25 + $0x1b4] ss:$8 sps:$4 sm:$0xff]   ;;  %v1005_v55 = vld [vmem:[%s1104_s25 + $0xb0] ss:$8 sps:$4 sm:$0xff]   ;;  %v1007_v57 = vld [vmem:[%s1104_s25 + $0xa4] ss:$8 sps:$4 sm:$0xff]   ;;  %v831_v5 = vcombine.low %v232_v47, %v232_v47  ;;  %v833_v6 = vcombine.low %v233_v49, %v233_v49 }
  0x28   : > { %641 = vmatpush1.bf16.msra.mxu0 %v957_v19  ;;  %v1006_v56 = vld [vmem:[%s1104_s25 + $0x1b0] ss:$8 sps:$4 sm:$0xff]   ;;  %v1009_v58 = vld [vmem:[%s1104_s25 + $0x1a4] ss:$8 sps:$4 sm:$0xff]   ;;  %v1011_v59 = vld [vmem:[%s1104_s25 + $0xa0] ss:$8 sps:$4 sm:$0xff]  }
  0x29   : > { %682 = vmatpush1.bf16.msra.mxu1 %v958_v20  ;;  %642 = vmatprep.subr.bf16.mxu0 %v959_v21  ;;  %v1012_v60 = vld [vmem:[%s1104_s25 + $0x1a0] ss:$8 sps:$4 sm:$0xff]   ;;  %v1013_v61 = vld [vmem:[%s1104_s25 + $0x94] ss:$8 sps:$4 sm:$0xff]   ;;  %v1017_v63 = vld [vmem:[%s1104_s25 + $0x90] ss:$8 sps:$4 sm:$0xff]  }
  0x2a   : > { %683 = vmatprep.subr.bf16.mxu1 %v961_v22  ;;  %664 = vmatprep.mubr.bf16.mxu0 %v832_v48  ;;  %v1015_v62 = vld [vmem:[%s1104_s25 + $0x194] ss:$8 sps:$4 sm:$0xff]   ;;  %v1018_v0 = vld [vmem:[%s1104_s25 + $0x190] ss:$8 sps:$4 sm:$0xff]   ;;  %v1019_v1 = vld [vmem:[%s1104_s25 + $0x84] ss:$8 sps:$4 sm:$0xff]  }
  0x2b   : > { %705 = vmatprep.mubr.bf16.mxu1 %v834_v52  ;;  %v1021_v2 = vld [vmem:[%s1104_s25 + $0x184] ss:$8 sps:$4 sm:$0xff]   ;;  %v1023_v3 = vld [vmem:[%s1104_s25 + $0x80] ss:$8 sps:$4 sm:$0xff]  }
  0x2c   : > { %643 = vmatpush1.bf16.msra.mxu0 %v963_v23  ;;  %v1024_v4 = vld [vmem:[%s1104_s25 + $0x180] ss:$8 sps:$4 sm:$0xff]  }
  0x2d   : > { %684 = vmatpush1.bf16.msra.mxu1 %v964_v24  ;;  %644 = vmatprep.subr.bf16.mxu0 %v965_v25  ;;  %v230_v8 = vld [vmem:[%s1219_s3] sm:$0xff]  ;;  %v231_v12 = vld [vmem:[%s1219_s3 + $0x8] sm:$0xff] }
  0x2e   : > { %685 = vmatprep.subr.bf16.mxu1 %v967_v26 }
  0x30   : > { %645 = vmatpush1.bf16.msra.mxu0 %v969_v27 }
  0x31   : > { %686 = vmatpush1.bf16.msra.mxu1 %v970_v28  ;;  %646 = vmatprep.subr.bf16.mxu0 %v971_v29 }
  0x32   : > { %687 = vmatprep.subr.bf16.mxu1 %v973_v30 }
  0x34   : > { %647 = vmatpush1.bf16.msra.mxu0 %v975_v31 }
  0x35   : > { %688 = vmatpush1.bf16.msra.mxu1 %v976_v32  ;;  %648 = vmatprep.subr.bf16.mxu0 %v977_v33 }
  0x36   : > { %689 = vmatprep.subr.bf16.mxu1 %v979_v34 }
  0x38   : > { %649 = vmatpush2.bf16.msra.mxu0 %v981_v35 }
  0x39   : > { %690 = vmatpush2.bf16.msra.mxu1 %v982_v36  ;;  %650 = vmatprep.subr.bf16.mxu0 %v983_v37 }
  0x3a   : > { %691 = vmatprep.subr.bf16.mxu1 %v985_v38 }
  0x3c   : > { %651 = vmatpush2.bf16.msra.mxu0 %v987_v39 }
  0x3d   : > { %692 = vmatpush2.bf16.msra.mxu1 %v988_v40  ;;  %652 = vmatprep.subr.bf16.mxu0 %v989_v41 }
  0x3e   : > { %693 = vmatprep.subr.bf16.mxu1 %v991_v42 }
  0x40   : > { %653 = vmatpush2.bf16.msra.mxu0 %v993_v43 }
  0x41   : > { %694 = vmatpush2.bf16.msra.mxu1 %v994_v44  ;;  %654 = vmatprep.subr.bf16.mxu0 %v995_v45 }
  0x42   : > { %695 = vmatprep.subr.bf16.mxu1 %v997_v46 }
  0x44   : > { %655 = vmatpush2.bf16.msra.mxu0 %v999_v50 }
  0x45   : > { %696 = vmatpush2.bf16.msra.mxu1 %v1000_v51  ;;  %656 = vmatprep.subr.bf16.mxu0 %v1001_v53 }
  0x46   : > { %697 = vmatprep.subr.bf16.mxu1 %v1003_v54 }
  0x48   : > { %657 = vmatpush2.bf16.msra.mxu0 %v1005_v55 }
  0x49   : > { %698 = vmatpush2.bf16.msra.mxu1 %v1006_v56  ;;  %658 = vmatprep.subr.bf16.mxu0 %v1007_v57 }
  0x4a   : > { %699 = vmatprep.subr.bf16.mxu1 %v1009_v58 }
  0x4c   : > { %659 = vmatpush2.bf16.msra.mxu0 %v1011_v59 }
  0x4d   : > { %700 = vmatpush2.bf16.msra.mxu1 %v1012_v60  ;;  %660 = vmatprep.subr.bf16.mxu0 %v1013_v61 }
  0x4e   : > { %701 = vmatprep.subr.bf16.mxu1 %v1015_v62 }
  0x50   : > { %661 = vmatpush2.bf16.msra.mxu0 %v1017_v63 }
  0x51   : > { %702 = vmatpush2.bf16.msra.mxu1 %v1018_v0  ;;  %662 = vmatprep.subr.bf16.mxu0 %v1019_v1 }
  0x52   : > { %703 = vmatprep.subr.bf16.mxu1 %v1021_v2 }
  0x54   : > { %663 = vmatpush2.bf16.msra.mxu0 %v1023_v3 }
  0x55   : > { %704 = vmatpush2.bf16.msra.mxu1 %v1024_v4 }
  0x57   : > { %665 = vmatmul.mubr.bf16.vlgmr.msra.gmra.mxu0 %v831_v5 }
  0x58   : > { %706 = vmatmul.mubr.bf16.vlgmr.msra.gmra.mxu1 %v833_v6 }
 0x117   : > { %v666_v7 = vpop.f32.mrf.mxu0 }
 0x118   : > { %v707_v9 = vpop.f32.mrf.mxu1 }
 0x119   : > { %v708_v10 = vadd.f32 %v707_v9, %v666_v7  ;;  %v668_v11 = vpop.f32.mrf.mxu0 }
 0x11a   : > { %v709_v13 = vpop.f32.mrf.mxu1 }
 0x11b   : > { %v714_v14 = vadd.f32 %v708_v10, %v230_v8  ;;  %v710_v15 = vadd.f32 %v709_v13, %v668_v11  ;;  %v670_v16 = vpop.f32.mrf.mxu0  ;;  %721 = sbr.rel (%p899_p7) target bundleno = 301 (0x12d), region = 40 }
 0x11c   : > { %v711_v17 = vpop.f32.mrf.mxu1 }
 0x11d   : > { %716 = vst [vmem:[%s1219_s3] sm:$0xff] %v714_v14  ;;  %v715_v18 = vadd.f32 %v710_v15, %v231_v12  ;;  %v671_v19 = vpop.f32.mrf.mxu0 }
 0x11e   : > { %v712_v20 = vpop.f32.mrf.mxu1 }
 0x11f   : > { %717 = vst [vmem:[%s1219_s3 + $0x8] sm:$0xff] %v715_v18 }
 0x120   : > { %v726_v21 = vlaneseq  ;;  %v724_v23 = vld [vmem:[%s1218_s2] sm:$0x3] }
 0x122   : > { %v727_v22 = vshrl.u32 %v726_v21, 7 }
 0x124   : > { %v728_v24 = vsub.s32 0, %v727_v22  ;;  %v732_v25 = vsub.s32 1, %v727_v22  ;;  %v722_v26 = vld [vmem:[%s1219_s3] sm:$0xff] }
 0x126   : > { %v723_v27 = vld [vmem:[%s1219_s3 + $0x8] sm:$0xff]  ;;  %v729_v28 = vrot.slane %v724_v23, %v728_v24  ;;  %v733_v29 = vrot.slane %v724_v23, %v732_v25 }
 0x128   : > { %v736_v30 = vadd.f32 %v729_v28, %v722_v26  ;;  %v737_v31 = vadd.f32 %v733_v29, %v723_v27 }
 0x12a   : > { %v738_v32 = vmax.f32 %v736_v30, 0.0  ;;  %v739_v33 = vmax.f32 %v737_v31, 0.0 }
 0x12c   : > { %740 = vst [vmem:[%s1219_s3] sm:$0xff] %v738_v32  ;;  %741 = vst [vmem:[%s1219_s3 + $0x8] sm:$0xff] %v739_v33 }
 0x12d PF: > { %s13_s14 = sadd.s32 1, %s1051_s14   ;;  %s1220_s12 = smov %s1047_s13 }
 0x12e   : > { %p10_p8 = scmp.ge.s32.totalorder %s13_s14, 10   ;;  %s1221_s13 = smov %s1223_s15 }
 0x130   :  { %12 = sbr.rel (!%p10_p8) target bundleno = 2 (0x2), region = 73 }

</bundles_post_ra>
